<compile_context>
chip_gen: v7x
topology: tpu7x:2x2x1
jax: 0.10.0
libtpu: 0.0.40
codegen_flags: <defaults>
</compile_context>

<pallas_src>
import functools

import jax
import jax.numpy as jnp
from jax.experimental import pallas as pl
from jax.experimental.pallas import tpu as pltpu

V_THRESHOLD_1 = 1.0  # IFNode(v_threshold=1.0)
V_THRESHOLD_2 = 1.0  # IFNode() default v_threshold


def _round_up(x, m):
    return ((x + m - 1) // m) * m


def tempo_jelly_kernel(x_ref, w1_ref, w2_ref, out_ref, *, T, B_tile):
    """All T latency steps for one batch tile.

    x_ref  : (T*B_tile, D_in_pad)   bf16 -- tile's steps stacked along rows
    w1_ref : (D_in_pad, D_feat_pad) bf16 -- resident (constant index_map)
    w2_ref : (D_feat_pad, D_out_pad) bf16 -- resident
    out_ref: (T, B_tile, D_out_pad) bf16 -- output spikes per step
    """
    # Hoisted layer-1 matmul: one MXU call with M = T*B_tile instead of T
    # latency-bound M = B_tile calls.
    h_all = jnp.dot(x_ref[...], w1_ref[...],
                    preferred_element_type=jnp.float32)   # (T*B_tile, D_feat) f32
    w2 = w2_ref[...]

    # Fresh membrane state per batch tile (functional.reset_net equivalent);
    # lives in vregs across the unrolled step loop, no scratch needed.
    v1 = jnp.zeros((B_tile, h_all.shape[1]), jnp.float32)
    v2 = jnp.zeros((B_tile, out_ref.shape[2]), jnp.float32)

    # T is a small static int -> fully unrolled; all slices/stores are static,
    # sublane-aligned (B_tile % 8 == 0) and lane-dense (128-wide).
    for t in range(T):
        h = h_all[t * B_tile:(t + 1) * B_tile, :]

        # IFNode 1: charge, fire, hard reset.
        v1 = v1 + h
        spk1 = v1 >= V_THRESHOLD_1
        v1 = jnp.where(spk1, 0.0, v1)

        # Layer 2 (time-sequential: depends on spk1 of this step).
        o = jnp.dot(spk1.astype(w2.dtype), w2,
                    preferred_element_type=jnp.float32)

        # IFNode 2: charge, fire, hard reset.
        v2 = v2 + o
        spk2 = v2 >= V_THRESHOLD_2
        v2 = jnp.where(spk2, 0.0, v2)

        out_ref[t] = spk2.astype(out_ref.dtype)


def tempo_jelly_forward(x_steps, w1_t, w2_t, *, compute_dtype=jnp.bfloat16,
                        batch_tile=None):
    """Run the full T-step stateful forward in one pallas_call.

    x_steps: [T, B, D_in] 0/1 spikes, w1_t: [D_in, D_feat], w2_t: [D_feat, D_out].
    Returns [T, B, D_out] float32 output spikes.
    """
    T, B, D_in = x_steps.shape
    D_in_w, D_feat = w1_t.shape
    D_feat_w, D_out = w2_t.shape
    assert D_in == D_in_w and D_feat == D_feat_w

    # Batch tile: multiple of 8 sublanes; cap at 256 (matches v6e/v7x MXU M
    # dimension for real workloads; tiny B just pads to 8).
    if batch_tile is None:
        batch_tile = min(_round_up(B, 8), 256)
    B_tile = batch_tile
    B_pad = _round_up(B, B_tile)
    n_tiles = B_pad // B_tile

    D_in_pad = _round_up(D_in, 128)     # lane-dense loads
    D_feat_pad = _round_up(D_feat, 128)
    D_out_pad = _round_up(D_out, 128)   # lane-dense (unmasked) output stores

    # Zero-pad in the wrapper; zeros never cross the spike threshold so padded
    # rows/columns stay silent and are sliced away afterwards.
    x_p = jnp.zeros((T, B_pad, D_in_pad), compute_dtype)
    x_p = x_p.at[:, :B, :D_in].set(x_steps.astype(compute_dtype))
    w1_p = jnp.zeros((D_in_pad, D_feat_pad), compute_dtype)
    w1_p = w1_p.at[:D_in, :D_feat].set(w1_t.astype(compute_dtype))
    w2_p = jnp.zeros((D_feat_pad, D_out_pad), compute_dtype)
    w2_p = w2_p.at[:D_feat, :D_out].set(w2_t.astype(compute_dtype))

    # Wrapper-side layout plumbing: group each batch tile's T steps
    # contiguously so the kernel sees one flat (T*B_tile, D_in_pad) slab and
    # can do a single hoisted layer-1 matmul.
    x_flat = (x_p.reshape(T, n_tiles, B_tile, D_in_pad)
                 .transpose(1, 0, 2, 3)
                 .reshape(n_tiles * T * B_tile, D_in_pad))

    itemsize = jnp.dtype(compute_dtype).itemsize
    flops = 2 * T * B_pad * (D_in_pad * D_feat_pad + D_feat_pad * D_out_pad)
    bytes_accessed = (
        T * B_pad * D_in_pad * itemsize        # streamed input spikes (bf16)
        + D_in_pad * D_feat_pad * itemsize     # w1 (resident)
        + D_feat_pad * D_out_pad * itemsize    # w2 (resident)
        + T * B_pad * D_out_pad * itemsize     # streamed output spikes (bf16)
    )

    kernel = functools.partial(tempo_jelly_kernel, T=T, B_tile=B_tile)

    out = pl.pallas_call(
        kernel,
        out_shape=jax.ShapeDtypeStruct((T, B_pad, D_out_pad), compute_dtype),
        grid=(n_tiles,),
        in_specs=[
            # Per-tile input slab (T steps stacked along rows).
            pl.BlockSpec((T * B_tile, D_in_pad), lambda b: (b, 0)),
            # Constant block index => weights fetched once, resident in VMEM.
            pl.BlockSpec((D_in_pad, D_feat_pad), lambda b: (0, 0)),
            pl.BlockSpec((D_feat_pad, D_out_pad), lambda b: (0, 0)),
        ],
        out_specs=pl.BlockSpec((T, B_tile, D_out_pad), lambda b: (0, b, 0)),
        compiler_params=pltpu.CompilerParams(
            # Batch tiles are independent (fresh membrane state each) ->
            # shardable across TensorCores on v7x.
            dimension_semantics=("parallel",),
        ),
        cost_estimate=pl.CostEstimate(
            flops=flops, transcendentals=0, bytes_accessed=bytes_accessed),
    )(x_flat, w1_p, w2_p)

    return out[:, :B, :D_out].astype(jnp.float32)


def reference_forward(x_steps, w1_t, w2_t):
    """Pure-JAX stateful IFNode reference (same operand dtype, f32 accumulation)."""
    T, B, _ = x_steps.shape
    v1 = jnp.zeros((B, w1_t.shape[1]), jnp.float32)
    v2 = jnp.zeros((B, w2_t.shape[1]), jnp.float32)
    outs = []
    for t in range(T):
        h = jnp.dot(x_steps[t].astype(w1_t.dtype), w1_t,
                    preferred_element_type=jnp.float32)
        v1 = v1 + h
        s1 = v1 >= V_THRESHOLD_1
        v1 = jnp.where(s1, 0.0, v1)
        o = jnp.dot(s1.astype(w2_t.dtype), w2_t,
                    preferred_element_type=jnp.float32)
        v2 = v2 + o
        s2 = v2 >= V_THRESHOLD_2
        v2 = jnp.where(s2, 0.0, v2)
        outs.append(s2.astype(jnp.float32))
    return jnp.stack(outs)


if __name__ == "__main__":
    # Shapes implied by the module: dims = (8, 8) -> input = 64,
    # feature = 2 * input = 128, output = out_dim = 32, batch = 2,
    # T = latency steps fused into one pallas_call.
    B = 2
    dims = (8, 8)
    D_in = dims[0] * dims[1]       # self.input
    D_feat = D_in * 2              # self.feature
    D_out = 32                     # self.output (out_dim)
    T = 8                          # latency / step count

    key = jax.random.PRNGKey(0)
    kx, kw1, kw2 = jax.random.split(key, 3)

    # Latency-encoded spikes are 0/1 valued, one slab per step.
    x_steps = (jax.random.uniform(kx, (T, B, D_in)) > 0.5).astype(jnp.float32)

    # nn.init.normal_(layer[0].weight, mean=0.4) -> mean 0.4, std 1.0
    w1 = 0.4 + jax.random.normal(kw1, (D_feat, D_in), dtype=jnp.float32)
    # layer[2]: default nn.Linear init (uniform, bound = 1/sqrt(fan_in))
    bound = 1.0 / jnp.sqrt(jnp.float32(D_feat))
    w2 = jax.random.uniform(kw2, (D_out, D_feat), minval=-bound, maxval=bound,
                            dtype=jnp.float32)

    # Pre-transpose for the kernel layout (x @ W.T == x @ W_t).
    w1_t = w1.T  # [D_in, D_feat]
    w2_t = w2.T  # [D_feat, D_out]

    out = tempo_jelly_forward(x_steps, w1_t, w2_t)
    out = jax.block_until_ready(out)

    # Reference uses the same bf16-cast weights with f32 accumulation so the
    # check validates the kernel, not the quantization choice.
    ref = reference_forward(x_steps,
                            w1_t.astype(jnp.bfloat16),
                            w2_t.astype(jnp.bfloat16))
    assert out.shape == (T, B, D_out)
    assert jnp.allclose(out, ref), "Pallas kernel mismatch vs reference"

    print("KERNEL_OK")
</pallas_src>

<mosaic_0001>
module attributes {stable_mosaic.version = 11 : i64} {
  func.func @tempo_jelly_kernel(%arg0: i32, %arg1: memref<64x128xbf16, #tpu.memory_space<vmem>>, %arg2: memref<128x128xbf16, #tpu.memory_space<vmem>>, %arg3: memref<128x128xbf16, #tpu.memory_space<vmem>>, %arg4: memref<8x8x128xbf16, #tpu.memory_space<vmem>>) attributes {dimension_semantics = [#tpu.dimension_semantics<parallel>], iteration_bounds = array<i64: 1>, scalar_prefetch = 0 : i64, scratch_operands = 0 : i64, tpu.core_type = #tpu.core_type<tc>, window_params = [{transform_indices = @transform_0, window_bounds = array<i64: 64, 128>}, {pipeline_mode = #tpu.pipeline_mode<synchronous>, transform_indices = @transform_1, window_bounds = array<i64: 128, 128>}, {pipeline_mode = #tpu.pipeline_mode<synchronous>, transform_indices = @transform_2, window_bounds = array<i64: 128, 128>}, {transform_indices = @transform_3, window_bounds = array<i64: 8, 8, 128>}]} {
    %c0 = arith.constant 0 : index
    %c0_0 = arith.constant 0 : index
    %0 = vector.load %arg1[%c0, %c0_0] : memref<64x128xbf16, #tpu.memory_space<vmem>>, vector<64x128xbf16>
    %c0_1 = arith.constant 0 : index
    %c0_2 = arith.constant 0 : index
    %1 = vector.load %arg2[%c0_1, %c0_2] : memref<128x128xbf16, #tpu.memory_space<vmem>>, vector<128x128xbf16>
    %cst = arith.constant dense<0.000000e+00> : vector<64x128xf32>
    %2 = tpu.matmul %0, %1, %cst {dimension_numbers = #tpu.dot_dimension_numbers<[1], [0], [0], [1], [0, 0, 1, 1], [], []>} : vector<64x128xbf16>, vector<128x128xbf16>, vector<64x128xf32> -> vector<64x128xf32>
    %c0_3 = arith.constant 0 : index
    %c0_4 = arith.constant 0 : index
    %3 = vector.load %arg3[%c0_3, %c0_4] : memref<128x128xbf16, #tpu.memory_space<vmem>>, vector<128x128xbf16>
    %cst_5 = arith.constant 0.000000e+00 : f32
    %4 = vector.broadcast %cst_5 : f32 to vector<8x128xf32>
    %cst_6 = arith.constant 0.000000e+00 : f32
    %5 = vector.broadcast %cst_6 : f32 to vector<8x128xf32>
    %6 = vector.extract_strided_slice %2 {offsets = [0, 0], sizes = [8, 128], strides = [1, 1]} : vector<64x128xf32> to vector<8x128xf32>
    %7 = arith.addf %4, %6 : vector<8x128xf32>
    %cst_7 = arith.constant 1.000000e+00 : f32
    %8 = vector.broadcast %cst_7 : f32 to vector<8x128xf32>
    %9 = arith.cmpf oge, %7, %8 : vector<8x128xf32>
    %cst_8 = arith.constant 0.000000e+00 : f32
    %10 = vector.broadcast %cst_8 : f32 to vector<8x128xf32>
    %11 = arith.select %9, %10, %7 : vector<8x128xi1>, vector<8x128xf32>
    %12 = arith.extui %9 : vector<8x128xi1> to vector<8x128xi32>
    %13 = arith.sitofp %12 : vector<8x128xi32> to vector<8x128xf32>
    %14 = arith.truncf %13 : vector<8x128xf32> to vector<8x128xbf16>
    %cst_9 = arith.constant dense<0.000000e+00> : vector<8x128xf32>
    %15 = tpu.matmul %14, %3, %cst_9 {dimension_numbers = #tpu.dot_dimension_numbers<[1], [0], [0], [1], [0, 0, 1, 1], [], []>} : vector<8x128xbf16>, vector<128x128xbf16>, vector<8x128xf32> -> vector<8x128xf32>
    %16 = arith.addf %5, %15 : vector<8x128xf32>
    %cst_10 = arith.constant 1.000000e+00 : f32
    %17 = vector.broadcast %cst_10 : f32 to vector<8x128xf32>
    %18 = arith.cmpf oge, %16, %17 : vector<8x128xf32>
    %cst_11 = arith.constant 0.000000e+00 : f32
    %19 = vector.broadcast %cst_11 : f32 to vector<8x128xf32>
    %20 = arith.select %18, %19, %16 : vector<8x128xi1>, vector<8x128xf32>
    %21 = arith.extui %18 : vector<8x128xi1> to vector<8x128xi32>
    %22 = arith.sitofp %21 : vector<8x128xi32> to vector<8x128xf32>
    %23 = arith.truncf %22 : vector<8x128xf32> to vector<8x128xbf16>
    %c0_12 = arith.constant 0 : index
    %c0_13 = arith.constant 0 : index
    %c0_14 = arith.constant 0 : index
    %24 = vector.load %arg4[%c0_12, %c0_13, %c0_14] : memref<8x8x128xbf16, #tpu.memory_space<vmem>>, vector<1x8x128xbf16>
    %25 = vector.shape_cast %24 : vector<1x8x128xbf16> to vector<8x128xbf16>
    %26 = vector.shape_cast %23 : vector<8x128xbf16> to vector<1x8x128xbf16>
    tpu.vector_store %arg4[%c0_12, %c0_13, %c0_14], %26 {strides = array<i32>} : memref<8x8x128xbf16, #tpu.memory_space<vmem>>, vector<1x8x128xbf16>,
    %27 = vector.extract_strided_slice %2 {offsets = [8, 0], sizes = [8, 128], strides = [1, 1]} : vector<64x128xf32> to vector<8x128xf32>
    %28 = arith.addf %11, %27 : vector<8x128xf32>
    %cst_15 = arith.constant 1.000000e+00 : f32
    %29 = vector.broadcast %cst_15 : f32 to vector<8x128xf32>
    %30 = arith.cmpf oge, %28, %29 : vector<8x128xf32>
    %cst_16 = arith.constant 0.000000e+00 : f32
    %31 = vector.broadcast %cst_16 : f32 to vector<8x128xf32>
    %32 = arith.select %30, %31, %28 : vector<8x128xi1>, vector<8x128xf32>
    %33 = arith.extui %30 : vector<8x128xi1> to vector<8x128xi32>
    %34 = arith.sitofp %33 : vector<8x128xi32> to vector<8x128xf32>
    %35 = arith.truncf %34 : vector<8x128xf32> to vector<8x128xbf16>
    %cst_17 = arith.constant dense<0.000000e+00> : vector<8x128xf32>
    %36 = tpu.matmul %35, %3, %cst_17 {dimension_numbers = #tpu.dot_dimension_numbers<[1], [0], [0], [1], [0, 0, 1, 1], [], []>} : vector<8x128xbf16>, vector<128x128xbf16>, vector<8x128xf32> -> vector<8x128xf32>
    %37 = arith.addf %20, %36 : vector<8x128xf32>
    %cst_18 = arith.constant 1.000000e+00 : f32
    %38 = vector.broadcast %cst_18 : f32 to vector<8x128xf32>
    %39 = arith.cmpf oge, %37, %38 : vector<8x128xf32>
    %cst_19 = arith.constant 0.000000e+00 : f32
    %40 = vector.broadcast %cst_19 : f32 to vector<8x128xf32>
    %41 = arith.select %39, %40, %37 : vector<8x128xi1>, vector<8x128xf32>
    %42 = arith.extui %39 : vector<8x128xi1> to vector<8x128xi32>
    %43 = arith.sitofp %42 : vector<8x128xi32> to vector<8x128xf32>
    %44 = arith.truncf %43 : vector<8x128xf32> to vector<8x128xbf16>
    %c1 = arith.constant 1 : index
    %c0_20 = arith.constant 0 : index
    %c0_21 = arith.constant 0 : index
    %45 = vector.load %arg4[%c1, %c0_20, %c0_21] : memref<8x8x128xbf16, #tpu.memory_space<vmem>>, vector<1x8x128xbf16>
    %46 = vector.shape_cast %45 : vector<1x8x128xbf16> to vector<8x128xbf16>
    %47 = vector.shape_cast %44 : vector<8x128xbf16> to vector<1x8x128xbf16>
    tpu.vector_store %arg4[%c1, %c0_20, %c0_21], %47 {strides = array<i32>} : memref<8x8x128xbf16, #tpu.memory_space<vmem>>, vector<1x8x128xbf16>,
    %48 = vector.extract_strided_slice %2 {offsets = [16, 0], sizes = [8, 128], strides = [1, 1]} : vector<64x128xf32> to vector<8x128xf32>
    %49 = arith.addf %32, %48 : vector<8x128xf32>
    %cst_22 = arith.constant 1.000000e+00 : f32
    %50 = vector.broadcast %cst_22 : f32 to vector<8x128xf32>
    %51 = arith.cmpf oge, %49, %50 : vector<8x128xf32>
    %cst_23 = arith.constant 0.000000e+00 : f32
    %52 = vector.broadcast %cst_23 : f32 to vector<8x128xf32>
    %53 = arith.select %51, %52, %49 : vector<8x128xi1>, vector<8x128xf32>
    %54 = arith.extui %51 : vector<8x128xi1> to vector<8x128xi32>
    %55 = arith.sitofp %54 : vector<8x128xi32> to vector<8x128xf32>
    %56 = arith.truncf %55 : vector<8x128xf32> to vector<8x128xbf16>
    %cst_24 = arith.constant dense<0.000000e+00> : vector<8x128xf32>
    %57 = tpu.matmul %56, %3, %cst_24 {dimension_numbers = #tpu.dot_dimension_numbers<[1], [0], [0], [1], [0, 0, 1, 1], [], []>} : vector<8x128xbf16>, vector<128x128xbf16>, vector<8x128xf32> -> vector<8x128xf32>
    %58 = arith.addf %41, %57 : vector<8x128xf32>
    %cst_25 = arith.constant 1.000000e+00 : f32
    %59 = vector.broadcast %cst_25 : f32 to vector<8x128xf32>
    %60 = arith.cmpf oge, %58, %59 : vector<8x128xf32>
    %cst_26 = arith.constant 0.000000e+00 : f32
    %61 = vector.broadcast %cst_26 : f32 to vector<8x128xf32>
    %62 = arith.select %60, %61, %58 : vector<8x128xi1>, vector<8x128xf32>
    %63 = arith.extui %60 : vector<8x128xi1> to vector<8x128xi32>
    %64 = arith.sitofp %63 : vector<8x128xi32> to vector<8x128xf32>
    %65 = arith.truncf %64 : vector<8x128xf32> to vector<8x128xbf16>
    %c2 = arith.constant 2 : index
    %c0_27 = arith.constant 0 : index
    %c0_28 = arith.constant 0 : index
    %66 = vector.load %arg4[%c2, %c0_27, %c0_28] : memref<8x8x128xbf16, #tpu.memory_space<vmem>>, vector<1x8x128xbf16>
    %67 = vector.shape_cast %66 : vector<1x8x128xbf16> to vector<8x128xbf16>
    %68 = vector.shape_cast %65 : vector<8x128xbf16> to vector<1x8x128xbf16>
    tpu.vector_store %arg4[%c2, %c0_27, %c0_28], %68 {strides = array<i32>} : memref<8x8x128xbf16, #tpu.memory_space<vmem>>, vector<1x8x128xbf16>,
    %69 = vector.extract_strided_slice %2 {offsets = [24, 0], sizes = [8, 128], strides = [1, 1]} : vector<64x128xf32> to vector<8x128xf32>
    %70 = arith.addf %53, %69 : vector<8x128xf32>
    %cst_29 = arith.constant 1.000000e+00 : f32
    %71 = vector.broadcast %cst_29 : f32 to vector<8x128xf32>
    %72 = arith.cmpf oge, %70, %71 : vector<8x128xf32>
    %cst_30 = arith.constant 0.000000e+00 : f32
    %73 = vector.broadcast %cst_30 : f32 to vector<8x128xf32>
    %74 = arith.select %72, %73, %70 : vector<8x128xi1>, vector<8x128xf32>
    %75 = arith.extui %72 : vector<8x128xi1> to vector<8x128xi32>
    %76 = arith.sitofp %75 : vector<8x128xi32> to vector<8x128xf32>
    %77 = arith.truncf %76 : vector<8x128xf32> to vector<8x128xbf16>
    %cst_31 = arith.constant dense<0.000000e+00> : vector<8x128xf32>
    %78 = tpu.matmul %77, %3, %cst_31 {dimension_numbers = #tpu.dot_dimension_numbers<[1], [0], [0], [1], [0, 0, 1, 1], [], []>} : vector<8x128xbf16>, vector<128x128xbf16>, vector<8x128xf32> -> vector<8x128xf32>
    %79 = arith.addf %62, %78 : vector<8x128xf32>
    %cst_32 = arith.constant 1.000000e+00 : f32
    %80 = vector.broadcast %cst_32 : f32 to vector<8x128xf32>
    %81 = arith.cmpf oge, %79, %80 : vector<8x128xf32>
    %cst_33 = arith.constant 0.000000e+00 : f32
    %82 = vector.broadcast %cst_33 : f32 to vector<8x128xf32>
    %83 = arith.select %81, %82, %79 : vector<8x128xi1>, vector<8x128xf32>
    %84 = arith.extui %81 : vector<8x128xi1> to vector<8x128xi32>
    %85 = arith.sitofp %84 : vector<8x128xi32> to vector<8x128xf32>
    %86 = arith.truncf %85 : vector<8x128xf32> to vector<8x128xbf16>
    %c3 = arith.constant 3 : index
    %c0_34 = arith.constant 0 : index
    %c0_35 = arith.constant 0 : index
    %87 = vector.load %arg4[%c3, %c0_34, %c0_35] : memref<8x8x128xbf16, #tpu.memory_space<vmem>>, vector<1x8x128xbf16>
    %88 = vector.shape_cast %87 : vector<1x8x128xbf16> to vector<8x128xbf16>
    %89 = vector.shape_cast %86 : vector<8x128xbf16> to vector<1x8x128xbf16>
    tpu.vector_store %arg4[%c3, %c0_34, %c0_35], %89 {strides = array<i32>} : memref<8x8x128xbf16, #tpu.memory_space<vmem>>, vector<1x8x128xbf16>,
    %90 = vector.extract_strided_slice %2 {offsets = [32, 0], sizes = [8, 128], strides = [1, 1]} : vector<64x128xf32> to vector<8x128xf32>
    %91 = arith.addf %74, %90 : vector<8x128xf32>
    %cst_36 = arith.constant 1.000000e+00 : f32
    %92 = vector.broadcast %cst_36 : f32 to vector<8x128xf32>
    %93 = arith.cmpf oge, %91, %92 : vector<8x128xf32>
    %cst_37 = arith.constant 0.000000e+00 : f32
    %94 = vector.broadcast %cst_37 : f32 to vector<8x128xf32>
    %95 = arith.select %93, %94, %91 : vector<8x128xi1>, vector<8x128xf32>
    %96 = arith.extui %93 : vector<8x128xi1> to vector<8x128xi32>
    %97 = arith.sitofp %96 : vector<8x128xi32> to vector<8x128xf32>
    %98 = arith.truncf %97 : vector<8x128xf32> to vector<8x128xbf16>
    %cst_38 = arith.constant dense<0.000000e+00> : vector<8x128xf32>
    %99 = tpu.matmul %98, %3, %cst_38 {dimension_numbers = #tpu.dot_dimension_numbers<[1], [0], [0], [1], [0, 0, 1, 1], [], []>} : vector<8x128xbf16>, vector<128x128xbf16>, vector<8x128xf32> -> vector<8x128xf32>
    %100 = arith.addf %83, %99 : vector<8x128xf32>
    %cst_39 = arith.constant 1.000000e+00 : f32
    %101 = vector.broadcast %cst_39 : f32 to vector<8x128xf32>
    %102 = arith.cmpf oge, %100, %101 : vector<8x128xf32>
    %cst_40 = arith.constant 0.000000e+00 : f32
    %103 = vector.broadcast %cst_40 : f32 to vector<8x128xf32>
    %104 = arith.select %102, %103, %100 : vector<8x128xi1>, vector<8x128xf32>
    %105 = arith.extui %102 : vector<8x128xi1> to vector<8x128xi32>
    %106 = arith.sitofp %105 : vector<8x128xi32> to vector<8x128xf32>
    %107 = arith.truncf %106 : vector<8x128xf32> to vector<8x128xbf16>
    %c4 = arith.constant 4 : index
    %c0_41 = arith.constant 0 : index
    %c0_42 = arith.constant 0 : index
    %108 = vector.load %arg4[%c4, %c0_41, %c0_42] : memref<8x8x128xbf16, #tpu.memory_space<vmem>>, vector<1x8x128xbf16>
    %109 = vector.shape_cast %108 : vector<1x8x128xbf16> to vector<8x128xbf16>
    %110 = vector.shape_cast %107 : vector<8x128xbf16> to vector<1x8x128xbf16>
    tpu.vector_store %arg4[%c4, %c0_41, %c0_42], %110 {strides = array<i32>} : memref<8x8x128xbf16, #tpu.memory_space<vmem>>, vector<1x8x128xbf16>,
    %111 = vector.extract_strided_slice %2 {offsets = [40, 0], sizes = [8, 128], strides = [1, 1]} : vector<64x128xf32> to vector<8x128xf32>
    %112 = arith.addf %95, %111 : vector<8x128xf32>
    %cst_43 = arith.constant 1.000000e+00 : f32
    %113 = vector.broadcast %cst_43 : f32 to vector<8x128xf32>
    %114 = arith.cmpf oge, %112, %113 : vector<8x128xf32>
    %cst_44 = arith.constant 0.000000e+00 : f32
    %115 = vector.broadcast %cst_44 : f32 to vector<8x128xf32>
    %116 = arith.select %114, %115, %112 : vector<8x128xi1>, vector<8x128xf32>
    %117 = arith.extui %114 : vector<8x128xi1> to vector<8x128xi32>
    %118 = arith.sitofp %117 : vector<8x128xi32> to vector<8x128xf32>
    %119 = arith.truncf %118 : vector<8x128xf32> to vector<8x128xbf16>
    %cst_45 = arith.constant dense<0.000000e+00> : vector<8x128xf32>
    %120 = tpu.matmul %119, %3, %cst_45 {dimension_numbers = #tpu.dot_dimension_numbers<[1], [0], [0], [1], [0, 0, 1, 1], [], []>} : vector<8x128xbf16>, vector<128x128xbf16>, vector<8x128xf32> -> vector<8x128xf32>
    %121 = arith.addf %104, %120 : vector<8x128xf32>
    %cst_46 = arith.constant 1.000000e+00 : f32
    %122 = vector.broadcast %cst_46 : f32 to vector<8x128xf32>
    %123 = arith.cmpf oge, %121, %122 : vector<8x128xf32>
    %cst_47 = arith.constant 0.000000e+00 : f32
    %124 = vector.broadcast %cst_47 : f32 to vector<8x128xf32>
    %125 = arith.select %123, %124, %121 : vector<8x128xi1>, vector<8x128xf32>
    %126 = arith.extui %123 : vector<8x128xi1> to vector<8x128xi32>
    %127 = arith.sitofp %126 : vector<8x128xi32> to vector<8x128xf32>
    %128 = arith.truncf %127 : vector<8x128xf32> to vector<8x128xbf16>
    %c5 = arith.constant 5 : index
    %c0_48 = arith.constant 0 : index
    %c0_49 = arith.constant 0 : index
    %129 = vector.load %arg4[%c5, %c0_48, %c0_49] : memref<8x8x128xbf16, #tpu.memory_space<vmem>>, vector<1x8x128xbf16>
    %130 = vector.shape_cast %129 : vector<1x8x128xbf16> to vector<8x128xbf16>
    %131 = vector.shape_cast %128 : vector<8x128xbf16> to vector<1x8x128xbf16>
    tpu.vector_store %arg4[%c5, %c0_48, %c0_49], %131 {strides = array<i32>} : memref<8x8x128xbf16, #tpu.memory_space<vmem>>, vector<1x8x128xbf16>,
    %132 = vector.extract_strided_slice %2 {offsets = [48, 0], sizes = [8, 128], strides = [1, 1]} : vector<64x128xf32> to vector<8x128xf32>
    %133 = arith.addf %116, %132 : vector<8x128xf32>
    %cst_50 = arith.constant 1.000000e+00 : f32
    %134 = vector.broadcast %cst_50 : f32 to vector<8x128xf32>
    %135 = arith.cmpf oge, %133, %134 : vector<8x128xf32>
    %cst_51 = arith.constant 0.000000e+00 : f32
    %136 = vector.broadcast %cst_51 : f32 to vector<8x128xf32>
    %137 = arith.select %135, %136, %133 : vector<8x128xi1>, vector<8x128xf32>
    %138 = arith.extui %135 : vector<8x128xi1> to vector<8x128xi32>
    %139 = arith.sitofp %138 : vector<8x128xi32> to vector<8x128xf32>
    %140 = arith.truncf %139 : vector<8x128xf32> to vector<8x128xbf16>
    %cst_52 = arith.constant dense<0.000000e+00> : vector<8x128xf32>
    %141 = tpu.matmul %140, %3, %cst_52 {dimension_numbers = #tpu.dot_dimension_numbers<[1], [0], [0], [1], [0, 0, 1, 1], [], []>} : vector<8x128xbf16>, vector<128x128xbf16>, vector<8x128xf32> -> vector<8x128xf32>
    %142 = arith.addf %125, %141 : vector<8x128xf32>
    %cst_53 = arith.constant 1.000000e+00 : f32
    %143 = vector.broadcast %cst_53 : f32 to vector<8x128xf32>
    %144 = arith.cmpf oge, %142, %143 : vector<8x128xf32>
    %cst_54 = arith.constant 0.000000e+00 : f32
    %145 = vector.broadcast %cst_54 : f32 to vector<8x128xf32>
    %146 = arith.select %144, %145, %142 : vector<8x128xi1>, vector<8x128xf32>
    %147 = arith.extui %144 : vector<8x128xi1> to vector<8x128xi32>
    %148 = arith.sitofp %147 : vector<8x128xi32> to vector<8x128xf32>
    %149 = arith.truncf %148 : vector<8x128xf32> to vector<8x128xbf16>
    %c6 = arith.constant 6 : index
    %c0_55 = arith.constant 0 : index
    %c0_56 = arith.constant 0 : index
    %150 = vector.load %arg4[%c6, %c0_55, %c0_56] : memref<8x8x128xbf16, #tpu.memory_space<vmem>>, vector<1x8x128xbf16>
    %151 = vector.shape_cast %150 : vector<1x8x128xbf16> to vector<8x128xbf16>
    %152 = vector.shape_cast %149 : vector<8x128xbf16> to vector<1x8x128xbf16>
    tpu.vector_store %arg4[%c6, %c0_55, %c0_56], %152 {strides = array<i32>} : memref<8x8x128xbf16, #tpu.memory_space<vmem>>, vector<1x8x128xbf16>,
    %153 = vector.extract_strided_slice %2 {offsets = [56, 0], sizes = [8, 128], strides = [1, 1]} : vector<64x128xf32> to vector<8x128xf32>
    %154 = arith.addf %137, %153 : vector<8x128xf32>
    %cst_57 = arith.constant 1.000000e+00 : f32
    %155 = vector.broadcast %cst_57 : f32 to vector<8x128xf32>
    %156 = arith.cmpf oge, %154, %155 : vector<8x128xf32>
    %157 = arith.extui %156 : vector<8x128xi1> to vector<8x128xi32>
    %158 = arith.sitofp %157 : vector<8x128xi32> to vector<8x128xf32>
    %159 = arith.truncf %158 : vector<8x128xf32> to vector<8x128xbf16>
    %cst_58 = arith.constant dense<0.000000e+00> : vector<8x128xf32>
    %160 = tpu.matmul %159, %3, %cst_58 {dimension_numbers = #tpu.dot_dimension_numbers<[1], [0], [0], [1], [0, 0, 1, 1], [], []>} : vector<8x128xbf16>, vector<128x128xbf16>, vector<8x128xf32> -> vector<8x128xf32>
    %161 = arith.addf %146, %160 : vector<8x128xf32>
    %cst_59 = arith.constant 1.000000e+00 : f32
    %162 = vector.broadcast %cst_59 : f32 to vector<8x128xf32>
    %163 = arith.cmpf oge, %161, %162 : vector<8x128xf32>
    %164 = arith.extui %163 : vector<8x128xi1> to vector<8x128xi32>
    %165 = arith.sitofp %164 : vector<8x128xi32> to vector<8x128xf32>
    %166 = arith.truncf %165 : vector<8x128xf32> to vector<8x128xbf16>
    %c7 = arith.constant 7 : index
    %c0_60 = arith.constant 0 : index
    %c0_61 = arith.constant 0 : index
    %167 = vector.load %arg4[%c7, %c0_60, %c0_61] : memref<8x8x128xbf16, #tpu.memory_space<vmem>>, vector<1x8x128xbf16>
    %168 = vector.shape_cast %167 : vector<1x8x128xbf16> to vector<8x128xbf16>
    %169 = vector.shape_cast %166 : vector<8x128xbf16> to vector<1x8x128xbf16>
    tpu.vector_store %arg4[%c7, %c0_60, %c0_61], %169 {strides = array<i32>} : memref<8x8x128xbf16, #tpu.memory_space<vmem>>, vector<1x8x128xbf16>,
    return
  }
  func.func @transform_0(%arg0: i32) -> (i32, i32) {
    %c0_i32 = arith.constant 0 : i32
    %c0_i32_0 = arith.constant 0 : i32
    return %arg0, %c0_i32 : i32, i32
  }
  func.func @transform_1(%arg0: i32) -> (i32, i32) {
    %c0_i32 = arith.constant 0 : i32
    %c0_i32_0 = arith.constant 0 : i32
    %c0_i32_1 = arith.constant 0 : i32
    return %c0_i32, %c0_i32_0 : i32, i32
  }
  func.func @transform_2(%arg0: i32) -> (i32, i32) {
    %c0_i32 = arith.constant 0 : i32
    %c0_i32_0 = arith.constant 0 : i32
    %c0_i32_1 = arith.constant 0 : i32
    return %c0_i32, %c0_i32_0 : i32, i32
  }
  func.func @transform_3(%arg0: i32) -> (i32, i32, i32) {
    %c0_i32 = arith.constant 0 : i32
    %c0_i32_0 = arith.constant 0 : i32
    %c0_i32_1 = arith.constant 0 : i32
    return %c0_i32, %arg0, %c0_i32_0 : i32, i32, i32
  }
}

</mosaic_0001>

<bundles_post_ra>
// kernel: tpu_custom_call.1
= control target key start
LH: loop header
LB: loop body
LE: loop exit
PB: predicated region body
PF: predicated region fallthrough
CT: control target
= control target key end

     0   :  { %8 = vsyncpa [#allocation3], 0  ;;  %s1479_s0 = inlined_call_operand.hbm [shape: bf16[64,128], index: 0, kind: input, shape index: {}]   ;;  %s1480_s1 = inlined_call_operand.hbm [shape: bf16[128,128], index: 1, kind: input, shape index: {}]   ;;  %s1481_s2 = inlined_call_operand.hbm [shape: bf16[128,128], index: 2, kind: input, shape index: {}]   ;;  %s1482_s3 = inlined_call_operand.hbm [shape: bf16[8,8,128], index: 3, kind: output, shape index: {}]  }
   0x1   :  { %9 = vsyncpa [#allocation6], 0 }
   0x2   :  { %10 = vsyncpa [#allocation4], 0  ;;  %s1171_s12 = smov [#allocation5]   ;;  %s1172_s14 = smov [#allocation2]  }
   0x3   :  { %s28_s13 = sshll.u32 %s1171_s12, 4  ;;  %s16_s15 = sshll.u32 %s1172_s14, 4  ;;  %s29_s13 = int_to_ptr.vmem [resolvable:$true] %s28_s13  ;;  %s1200_s15 = int_to_ptr.vmem [resolvable:$true] %s16_s15 }
   0x4   :  { %s1077_s18 = scalar_lea.hbm %s1480_s1, 1024 }
   0x5   :  { %p1078_p0 = scmp.ne.s32.totalorder %s1480_s1, %s1077_s18  ;;  %p1081_p1 = scmp.lt.u32.totalorder %s1077_s18, %s1480_s1 }
   0x7   :  { %p1083_p2 = pnand %p1081_p1, %p1078_p0 }
   0x9   :  { %1086 = shalt.err (!%p1083_p2)
}
   0xa   :  { %s1087_s23 = scalar_lea.vmem %s29_s13, 1024  ;;  %p1092_p4 = scmp.lt.s32.totalorder %s29_s13, %s29_s13 }
   0xb   :  { %p1088_p3 = scmp.ne.s32.totalorder %s29_s13, %s1087_s23  ;;  %p1093_p5 = scmp.lt.s32.totalorder %s1087_s23, %s1087_s23 }
   0xd   :  { %p1094_p6 = por %p1093_p5, %p1092_p4 }
   0xf   :  { %p1095_p7 = pnand %p1094_p6, %p1088_p3 }
  0x11   :  { %1098 = shalt.err (!%p1095_p7)
}
  0x12   :  { %s1173_s24 = smov 64   ;;  %s1174_s25 = smov 4  }
  0x13   :  { %34 = dma.hbm_to_vmem [thread:$0]  %s1480_s1, 1024, %s29_s13, [#allocation6], %s1173_s24, %s1173_s24, %s1174_s25  }
  0x14   :  { %s1099_s30 = scalar_lea.hbm %s1479_s0, 512 }
  0x15   :  { %p1100_p8 = scmp.ne.s32.totalorder %s1479_s0, %s1099_s30  ;;  %p1103_p9 = scmp.lt.u32.totalorder %s1099_s30, %s1479_s0 }
  0x17   :  { %p1105_p10 = pnand %p1103_p9, %p1100_p8 }
  0x19   :  { %1108 = shalt.err (!%p1105_p10)
}
  0x1a   :  { %s1109_s8 = scalar_lea.vmem %s1200_s15, 512  ;;  %p1114_p12 = scmp.lt.s32.totalorder %s1200_s15, %s1200_s15 }
  0x1b   :  { %p1110_p11 = scmp.ne.s32.totalorder %s1200_s15, %s1109_s8  ;;  %p1115_p13 = scmp.lt.s32.totalorder %s1109_s8, %s1109_s8 }
  0x1d   :  { %p1116_p0 = por %p1115_p13, %p1114_p12 }
  0x1f   :  { %p1117_p1 = pnand %p1116_p0, %p1110_p11 }
  0x21   :  { %1120 = shalt.err (!%p1117_p1)
}
  0x22   :  { %22 = dma.hbm_to_vmem [thread:$0]  %s1479_s0, 512, %s1200_s15, [#allocation3], %s1173_s24, %s1173_s24, %s1174_s25  }
  0x23   :  { %s1175_s10 = smov [#allocation7]   ;;  %s1121_s14 = scalar_lea.hbm %s1481_s2, 1024 }
  0x24   :  { %s40_s11 = sshll.u32 %s1175_s10, 4  ;;  %p1122_p2 = scmp.ne.s32.totalorder %s1481_s2, %s1121_s14  ;;  %s41_s11 = int_to_ptr.vmem [resolvable:$true] %s40_s11 }
  0x25   :  { %p1125_p3 = scmp.lt.u32.totalorder %s1121_s14, %s1481_s2 }
  0x27   :  { %p1127_p4 = pnand %p1125_p3, %p1122_p2 }
  0x29   :  { %1130 = shalt.err (!%p1127_p4)
}
  0x2a   :  { %s1131_s20 = scalar_lea.vmem %s41_s11, 1024  ;;  %p1136_p6 = scmp.lt.s32.totalorder %s41_s11, %s41_s11 }
  0x2b   :  { %p1132_p5 = scmp.ne.s32.totalorder %s41_s11, %s1131_s20  ;;  %p1137_p7 = scmp.lt.s32.totalorder %s1131_s20, %s1131_s20 }
  0x2d   :  { %p1138_p8 = por %p1137_p7, %p1136_p6 }
  0x2f   :  { %p1139_p9 = pnand %p1138_p8, %p1132_p5 }
  0x31   :  { %1142 = shalt.err (!%p1139_p9)
}
  0x32   :  { %46 = dma.hbm_to_vmem [thread:$0]  %s1481_s2, 1024, %s41_s11, [#allocation6], %s1173_s24, %s1173_s24, %s1174_s25  }
  0x33   :  { %1165 = dma.done.wait [#allocation3], 512  }
  0x34   :  { %1166 = vsyncadd [#allocation3], 4294966784 }
  0x35   :  { %1167 = dma.done.wait [#allocation6], 2048  }
  0x36   :  { %1168 = vsyncadd [#allocation6], 4294965248  ;;  %v1176_v0 = vmov 0.0   ;;  %v1057_v1 = vld [vmem:[#allocation5] sm:$0xff]   ;;  %v1058_v2 = vld [vmem:[#allocation5 + $0x8] sm:$0xff]   ;;  %vm1177_vm0 = vmmov 0  }
  0x37   :  { %888 = vmatprep.subr.bf16.mxu1 %v1176_v0  ;;  %864 = vmatprep.subr.bf16.mxu0 %v1057_v1  ;;  %v1059_v3 = vld [vmem:[#allocation5 + $0x10] sm:$0xff]   ;;  %v1060_v4 = vld [vmem:[#allocation5 + $0x18] sm:$0xff]   ;;  %v1065_v5 = vld [vmem:[#allocation2] sm:$0xff]   ;;  %v1178_v27 = vmov 1.0|1.0   ;;  %s1179_s2 = smov [#allocation8]  }
  0x38   :  { %865 = vmatpush3.bf16.msra.mxu0 %v1057_v1  ;;  %880 = vmatprep.mubr.bf16.mxu0 %v1065_v5  ;;  %v1061_v6 = vld [vmem:[#allocation5 + $0x20] sm:$0xff]   ;;  %v1256_v8 = vld [vmem:[#allocation7 + $0x8] sm:$0xff]   ;;  %v1260_v10 = vld [vmem:[#allocation7 + $0x10] sm:$0xff]   ;;  %s715_s21 = sshll.u32 %s1179_s2, 4  ;;  %s716_s21 = int_to_ptr.vmem [resolvable:$true] %s715_s21 }
  0x39   :  { %866 = vmatprep.subr.bf16.mxu0 %v1058_v2  ;;  %v1253_v7 = vld [vmem:[#allocation7] sm:$0xff]   ;;  %v1062_v9 = vld [vmem:[#allocation5 + $0x28] sm:$0xff]   ;;  %v1063_v11 = vld [vmem:[#allocation5 + $0x30] sm:$0xff]   ;;  %904 = vmatprep.mubr.msk.bf16.mxu1 %vm1177_vm0, %v1176_v0  ;;  %s1143_s22 = scalar_lea.vmem %s716_s21, 512  ;;  %p1148_p11 = scmp.lt.s32.totalorder %s716_s21, %s716_s21 }
  0x3a   :  { %889 = vmatpush3.bf16.msra.mxu1 %v1253_v7  ;;  %v1264_v12 = vld [vmem:[#allocation7 + $0x18] sm:$0xff]   ;;  %v1268_v14 = vld [vmem:[#allocation7 + $0x20] sm:$0xff]   ;;  %v1066_v15 = vld [vmem:[#allocation2 + $0x8] sm:$0xff]   ;;  %p1144_p10 = scmp.ne.s32.totalorder %s716_s21, %s1143_s22  ;;  %p1149_p12 = scmp.lt.s32.totalorder %s1143_s22, %s1143_s22 }
  0x3b   :  { %890 = vmatprep.subr.bf16.mxu1 %v1176_v0  ;;  %v1064_v13 = vld [vmem:[#allocation5 + $0x38] sm:$0xff]   ;;  %v1272_v16 = vld [vmem:[#allocation7 + $0x28] sm:$0xff]   ;;  %v1067_v17 = vld [vmem:[#allocation2 + $0x10] sm:$0xff]  }
  0x3c   :  { %867 = vmatpush3.bf16.msra.mxu0 %v1058_v2  ;;  %v1277_v18 = vld [vmem:[#allocation7 + $0x30] sm:$0xff]   ;;  %v1068_v19 = vld [vmem:[#allocation2 + $0x18] sm:$0xff]   ;;  %p1150_p13 = por %p1149_p12, %p1148_p11 }
  0x3d   :  { %868 = vmatprep.subr.bf16.mxu0 %v1059_v3  ;;  %v1296_v20 = vld [vmem:[#allocation7 + $0x38] sm:$0xff]  }
  0x3e   :  { %891 = vmatpush3.bf16.msra.mxu1 %v1256_v8  ;;  %p1151_p0 = pnand %p1150_p13, %p1144_p10 }
  0x3f   :  { %892 = vmatprep.subr.bf16.mxu1 %v1176_v0 }
  0x40   :  { %869 = vmatpush3.bf16.msra.mxu0 %v1059_v3 }
  0x41   :  { %870 = vmatprep.subr.bf16.mxu0 %v1060_v4 }
  0x42   :  { %893 = vmatpush3.bf16.msra.mxu1 %v1260_v10 }
  0x43   :  { %894 = vmatprep.subr.bf16.mxu1 %v1176_v0 }
  0x44   :  { %871 = vmatpush3.bf16.msra.mxu0 %v1060_v4 }
  0x45   :  { %872 = vmatprep.subr.bf16.mxu0 %v1061_v6 }
  0x46   :  { %895 = vmatpush3.bf16.msra.mxu1 %v1264_v12 }
  0x47   :  { %896 = vmatprep.subr.bf16.mxu1 %v1176_v0 }
  0x48   :  { %873 = vmatpush3.bf16.msra.mxu0 %v1061_v6 }
  0x49   :  { %874 = vmatprep.subr.bf16.mxu0 %v1062_v9 }
  0x4a   :  { %897 = vmatpush3.bf16.msra.mxu1 %v1268_v14 }
  0x4b   :  { %898 = vmatprep.subr.bf16.mxu1 %v1176_v0 }
  0x4c   :  { %875 = vmatpush3.bf16.msra.mxu0 %v1062_v9 }
  0x4d   :  { %876 = vmatprep.subr.bf16.mxu0 %v1063_v11 }
  0x4e   :  { %899 = vmatpush3.bf16.msra.mxu1 %v1272_v16 }
  0x4f   :  { %900 = vmatprep.subr.bf16.mxu1 %v1176_v0 }
  0x50   :  { %877 = vmatpush3.bf16.msra.mxu0 %v1063_v11 }
  0x51   :  { %878 = vmatprep.subr.bf16.mxu0 %v1064_v13 }
  0x52   :  { %901 = vmatpush3.bf16.msra.mxu1 %v1277_v18 }
  0x53   :  { %902 = vmatprep.subr.bf16.mxu1 %v1176_v0 }
  0x54   :  { %879 = vmatpush3.bf16.msra.mxu0 %v1064_v13 }
  0x55   :  { %908 = vmatprep.subr.bf16.mxu0 %v1176_v0 }
  0x56   :  { %903 = vmatpush3.bf16.msra.mxu1 %v1296_v20 }
  0x57   :  { %881 = vmatmul.mubr.bf16.vlgmr.msra.gmra.mrb[0].mxu0 %v1066_v15  ;;  %928 = vmatprep.subr.bf16.mxu1 %v1176_v0 }
  0x58   :  { %884 = vmatprep.mubr.bf16.mxu0 %v1067_v17  ;;  %909 = vmatpush3.bf16.msra.mxu0 %v1253_v7 }
  0x59   :  { %910 = vmatprep.subr.bf16.mxu0 %v1176_v0 }
  0x5c   :  { %911 = vmatpush3.bf16.msra.mxu0 %v1256_v8 }
  0x5d   :  { %912 = vmatprep.subr.bf16.mxu0 %v1176_v0 }
  0x5f   :  { %885 = vmatmul.mubr.bf16.gmra.mrb[4].mxu0 %v1068_v19 }
  0x60   :  { %913 = vmatpush3.bf16.msra.mxu0 %v1260_v10  ;;  %924 = vmatprep.mubr.msk.bf16.mxu0 %vm1177_vm0, %v1176_v0 }
  0x61   :  { %914 = vmatprep.subr.bf16.mxu0 %v1176_v0 }
  0x64   :  { %915 = vmatpush3.bf16.msra.mxu0 %v1264_v12 }
  0x65   :  { %916 = vmatprep.subr.bf16.mxu0 %v1176_v0 }
  0x68   :  { %917 = vmatpush3.bf16.msra.mxu0 %v1268_v14 }
  0x69   :  { %918 = vmatprep.subr.bf16.mxu0 %v1176_v0 }
  0x6c   :  { %919 = vmatpush3.bf16.msra.mxu0 %v1272_v16 }
  0x6d   :  { %920 = vmatprep.subr.bf16.mxu0 %v1176_v0 }
  0x70   :  { %921 = vmatpush3.bf16.msra.mxu0 %v1277_v18 }
  0x71   :  { %922 = vmatprep.subr.bf16.mxu0 %v1176_v0 }
  0x74   :  { %923 = vmatpush3.bf16.msra.mxu0 %v1296_v20 }
  0x75   :  { %948 = vmatprep.subr.bf16.mxu0 %v1176_v0 }
 0x12a   :  { %v882_v21 = vpop.f32.mrb[0].mxu0 }
 0x12b   :  { %v187_v22 = vpop.f32.mrb[1].mxu0 }
 0x12c   :  { %vm235_vm1 = vcmp.ge.f32.partialorder %v187_v22, 1.0  ;;  %v883_v23 = vpop.f32.mrb[2].mxu0 }
 0x12d   :  { %vm749_vm2 = vmpackc.low %vm235_vm1, %vm235_vm1  ;;  %v190_v24 = vpop.f32.mrb[3].mxu0  ;;  %v236_v25 = vsel %vm235_vm1, 0.0, %v187_v22 }
 0x12e   :  { %v334_v26 = vadd.f32 %v236_v25, %v190_v24  ;;  %905 = vmatmul.mubr.msk.bf16.vlgmr.msra.gmra.mrb[0].mxu1 %vm749_vm2, %v1178_v27 }
 0x12f   :  { %929 = vmatpush3.bf16.msra.mxu1 %v1253_v7  ;;  %944 = vmatprep.mubr.msk.bf16.mxu1 %vm1177_vm0, %v1176_v0 }
 0x130   :  { %vm335_vm3 = vcmp.ge.f32.partialorder %v334_v26, 1.0  ;;  %930 = vmatprep.subr.bf16.mxu1 %v1176_v0 }
 0x131   :  { %v336_v28 = vsel %vm335_vm3, 0.0, %v334_v26  ;;  %vm753_vm4 = vmpackc.low %vm335_vm3, %vm335_vm3 }
 0x132   :  { %v388_v29 = vadd.f32 %v882_v21, %v336_v28  ;;  %925 = vmatmul.mubr.msk.bf16.vlgmr.msra.gmra.mrb[8].mxu0 %vm753_vm4, %v1178_v27  ;;  %v886_v30 = vpop.f32.mrb[4].mxu0 }
 0x133   :  { %931 = vmatpush3.bf16.msra.mxu1 %v1256_v8  ;;  %949 = vmatpush3.bf16.msra.mxu0 %v1253_v7  ;;  %v203_v31 = vpop.f32.mrb[5].mxu0 }
 0x134   :  { %932 = vmatprep.subr.bf16.mxu1 %v1176_v0  ;;  %950 = vmatprep.subr.bf16.mxu0 %v1176_v0  ;;  %vm389_vm5 = vcmp.ge.f32.partialorder %v388_v29, 1.0  ;;  %v887_v32 = vpop.f32.mrb[6].mxu0 }
 0x135   :  { %v390_v33 = vsel %vm389_vm5, 0.0, %v388_v29  ;;  %v206_v34 = vpop.f32.mrb[7].mxu0  ;;  %964 = vmatprep.mubr.msk.bf16.mxu0 %vm1177_vm0, %v1176_v0  ;;  %vm757_vm10 = vmpackc.low %vm389_vm5, %vm389_vm5 }
 0x136   :  { %v442_v35 = vadd.f32 %v883_v23, %v390_v33 }
 0x137   :  { %933 = vmatpush3.bf16.msra.mxu1 %v1260_v10  ;;  %951 = vmatpush3.bf16.msra.mxu0 %v1256_v8 }
 0x138   :  { %vm443_vm6 = vcmp.ge.f32.partialorder %v442_v35, 1.0  ;;  %934 = vmatprep.subr.bf16.mxu1 %v1176_v0  ;;  %952 = vmatprep.subr.bf16.mxu0 %v1176_v0 }
 0x139   :  { %v444_v36 = vsel %vm443_vm6, 0.0, %v442_v35  ;;  %vm761_vm11 = vmpackc.low %vm443_vm6, %vm443_vm6 }
 0x13a   :  { %v1324_v37 = vadd.f32 %v444_v36, %v203_v31 }
 0x13b   :  { %935 = vmatpush3.bf16.msra.mxu1 %v1264_v12  ;;  %953 = vmatpush3.bf16.msra.mxu0 %v1260_v10 }
 0x13c   :  { %vm497_vm7 = vcmp.ge.f32.partialorder %v1324_v37, 1.0  ;;  %936 = vmatprep.subr.bf16.mxu1 %v1176_v0  ;;  %954 = vmatprep.subr.bf16.mxu0 %v1176_v0 }
 0x13d   :  { %v498_v38 = vsel %vm497_vm7, 0.0, %v1324_v37  ;;  %vm765_vm12 = vmpackc.low %vm497_vm7, %vm497_vm7 }
 0x13e   :  { %v1334_v39 = vadd.f32 %v498_v38, %v206_v34 }
 0x13f   :  { %937 = vmatpush3.bf16.msra.mxu1 %v1268_v14  ;;  %955 = vmatpush3.bf16.msra.mxu0 %v1264_v12 }
 0x140   :  { %vm551_vm8 = vcmp.ge.f32.partialorder %v1334_v39, 1.0  ;;  %938 = vmatprep.subr.bf16.mxu1 %v1176_v0  ;;  %956 = vmatprep.subr.bf16.mxu0 %v1176_v0 }
 0x141   :  { %v552_v40 = vsel %vm551_vm8, 0.0, %v1334_v39  ;;  %vm769_vm13 = vmpackc.low %vm551_vm8, %vm551_vm8 }
 0x142   :  { %v1344_v41 = vadd.f32 %v886_v30, %v552_v40 }
 0x143   :  { %939 = vmatpush3.bf16.msra.mxu1 %v1272_v16  ;;  %957 = vmatpush3.bf16.msra.mxu0 %v1268_v14 }
 0x144   :  { %vm605_vm9 = vcmp.ge.f32.partialorder %v1344_v41, 1.0  ;;  %940 = vmatprep.subr.bf16.mxu1 %v1176_v0  ;;  %958 = vmatprep.subr.bf16.mxu0 %v1176_v0 }
 0x145   :  { %v606_v42 = vsel %vm605_vm9, 0.0, %v1344_v41  ;;  %vm773_vm14 = vmpackc.low %vm605_vm9, %vm605_vm9 }
 0x146   :  { %v1354_v43 = vadd.f32 %v887_v32, %v606_v42 }
 0x147   :  { %941 = vmatpush3.bf16.msra.mxu1 %v1277_v18  ;;  %959 = vmatpush3.bf16.msra.mxu0 %v1272_v16 }
 0x148   :  { %942 = vmatprep.subr.bf16.mxu1 %v1176_v0  ;;  %960 = vmatprep.subr.bf16.mxu0 %v1176_v0  ;;  %vm659_vm15 = vcmp.ge.f32.partialorder %v1354_v43, 1.0 }
 0x14b   :  { %943 = vmatpush3.bf16.msra.mxu1 %v1296_v20  ;;  %961 = vmatpush3.bf16.msra.mxu0 %v1277_v18 }
 0x14c   :  { %962 = vmatprep.subr.bf16.mxu0 %v1176_v0  ;;  %968 = vmatprep.subr.bf16.mxu1 %v1176_v0 }
 0x14e   :  { %945 = vmatmul.mubr.msk.bf16.vlgmr.msra.gmra.mrb[4].mxu1 %vm757_vm10, %v1178_v27 }
 0x14f   :  { %963 = vmatpush3.bf16.msra.mxu0 %v1296_v20  ;;  %969 = vmatpush3.bf16.msra.mxu1 %v1253_v7 }
 0x150   :  { %970 = vmatprep.subr.bf16.mxu1 %v1176_v0  ;;  %988 = vmatprep.subr.bf16.mxu0 %v1176_v0 }
 0x151   :  { %984 = vmatprep.mubr.msk.bf16.mxu1 %vm1177_vm0, %v1176_v0 }
 0x152   :  { %965 = vmatmul.mubr.msk.bf16.vlgmr.msra.gmra.mrb[12].mxu0 %vm761_vm11, %v1178_v27 }
 0x153   :  { %971 = vmatpush3.bf16.msra.mxu1 %v1256_v8  ;;  %989 = vmatpush3.bf16.msra.mxu0 %v1253_v7 }
 0x154   :  { %972 = vmatprep.subr.bf16.mxu1 %v1176_v0  ;;  %990 = vmatprep.subr.bf16.mxu0 %v1176_v0 }
 0x155   :  { %1004 = vmatprep.mubr.msk.bf16.mxu0 %vm1177_vm0, %v1176_v0 }
 0x157   :  { %973 = vmatpush3.bf16.msra.mxu1 %v1260_v10  ;;  %991 = vmatpush3.bf16.msra.mxu0 %v1256_v8 }
 0x158   :  { %974 = vmatprep.subr.bf16.mxu1 %v1176_v0  ;;  %992 = vmatprep.subr.bf16.mxu0 %v1176_v0 }
 0x15b   :  { %975 = vmatpush3.bf16.msra.mxu1 %v1264_v12  ;;  %993 = vmatpush3.bf16.msra.mxu0 %v1260_v10 }
 0x15c   :  { %976 = vmatprep.subr.bf16.mxu1 %v1176_v0  ;;  %994 = vmatprep.subr.bf16.mxu0 %v1176_v0 }
 0x15f   :  { %977 = vmatpush3.bf16.msra.mxu1 %v1268_v14  ;;  %995 = vmatpush3.bf16.msra.mxu0 %v1264_v12 }
 0x160   :  { %978 = vmatprep.subr.bf16.mxu1 %v1176_v0  ;;  %996 = vmatprep.subr.bf16.mxu0 %v1176_v0 }
 0x163   :  { %979 = vmatpush3.bf16.msra.mxu1 %v1272_v16  ;;  %997 = vmatpush3.bf16.msra.mxu0 %v1268_v14 }
 0x164   :  { %980 = vmatprep.subr.bf16.mxu1 %v1176_v0  ;;  %998 = vmatprep.subr.bf16.mxu0 %v1176_v0 }
 0x167   :  { %981 = vmatpush3.bf16.msra.mxu1 %v1277_v18  ;;  %999 = vmatpush3.bf16.msra.mxu0 %v1272_v16 }
 0x168   :  { %982 = vmatprep.subr.bf16.mxu1 %v1176_v0  ;;  %1000 = vmatprep.subr.bf16.mxu0 %v1176_v0 }
 0x16b   :  { %983 = vmatpush3.bf16.msra.mxu1 %v1296_v20  ;;  %1001 = vmatpush3.bf16.msra.mxu0 %v1277_v18 }
 0x16c   :  { %1002 = vmatprep.subr.bf16.mxu0 %v1176_v0  ;;  %1008 = vmatprep.subr.bf16.mxu1 %v1176_v0 }
 0x16e   :  { %985 = vmatmul.mubr.msk.bf16.vlgmr.msra.gmra.mrb[8].mxu1 %vm765_vm12, %v1178_v27 }
 0x16f   :  { %1003 = vmatpush3.bf16.msra.mxu0 %v1296_v20  ;;  %1009 = vmatpush3.bf16.msra.mxu1 %v1253_v7 }
 0x170   :  { %1010 = vmatprep.subr.bf16.mxu1 %v1176_v0  ;;  %1028 = vmatprep.subr.bf16.mxu0 %v1176_v0 }
 0x171   :  { %1024 = vmatprep.mubr.msk.bf16.mxu1 %vm1177_vm0, %v1176_v0 }
 0x172   :  { %1005 = vmatmul.mubr.msk.bf16.vlgmr.msra.gmra.mrb[16].mxu0 %vm769_vm13, %v1178_v27 }
 0x173   :  { %1011 = vmatpush3.bf16.msra.mxu1 %v1256_v8  ;;  %1029 = vmatpush3.bf16.msra.mxu0 %v1253_v7 }
 0x174   :  { %1012 = vmatprep.subr.bf16.mxu1 %v1176_v0  ;;  %1030 = vmatprep.subr.bf16.mxu0 %v1176_v0 }
 0x175   :  { %1044 = vmatprep.mubr.msk.bf16.mxu0 %vm1177_vm0, %v1176_v0  ;;  %vm777_vm0 = vmpackc.low %vm659_vm15, %vm659_vm15 }
 0x177   :  { %1013 = vmatpush3.bf16.msra.mxu1 %v1260_v10  ;;  %1031 = vmatpush3.bf16.msra.mxu0 %v1256_v8 }
 0x178   :  { %1014 = vmatprep.subr.bf16.mxu1 %v1176_v0  ;;  %1032 = vmatprep.subr.bf16.mxu0 %v1176_v0 }
 0x17b   :  { %1015 = vmatpush3.bf16.msra.mxu1 %v1264_v12  ;;  %1033 = vmatpush3.bf16.msra.mxu0 %v1260_v10 }
 0x17c   :  { %1016 = vmatprep.subr.bf16.mxu1 %v1176_v0  ;;  %1034 = vmatprep.subr.bf16.mxu0 %v1176_v0 }
 0x17f   :  { %1017 = vmatpush3.bf16.msra.mxu1 %v1268_v14  ;;  %1035 = vmatpush3.bf16.msra.mxu0 %v1264_v12 }
 0x180   :  { %1018 = vmatprep.subr.bf16.mxu1 %v1176_v0  ;;  %1036 = vmatprep.subr.bf16.mxu0 %v1176_v0 }
 0x183   :  { %1019 = vmatpush3.bf16.msra.mxu1 %v1272_v16  ;;  %1037 = vmatpush3.bf16.msra.mxu0 %v1268_v14 }
 0x184   :  { %1020 = vmatprep.subr.bf16.mxu1 %v1176_v0  ;;  %1038 = vmatprep.subr.bf16.mxu0 %v1176_v0 }
 0x187   :  { %1021 = vmatpush3.bf16.msra.mxu1 %v1277_v18  ;;  %1039 = vmatpush3.bf16.msra.mxu0 %v1272_v16 }
 0x188   :  { %1022 = vmatprep.subr.bf16.mxu1 %v1176_v0  ;;  %1040 = vmatprep.subr.bf16.mxu0 %v1176_v0 }
 0x18b   :  { %1023 = vmatpush3.bf16.msra.mxu1 %v1296_v20  ;;  %1041 = vmatpush3.bf16.msra.mxu0 %v1277_v18 }
 0x18c   :  { %1042 = vmatprep.subr.bf16.mxu0 %v1176_v0 }
 0x18e   :  { %1025 = vmatmul.mubr.msk.bf16.vlgmr.msra.gmra.mrb[12].mxu1 %vm773_vm14, %v1178_v27 }
 0x18f   :  { %1043 = vmatpush3.bf16.msra.mxu0 %v1296_v20 }
 0x192   :  { %1045 = vmatmul.mubr.msk.bf16.vlgmr.msra.gmra.mrb[20].mxu0 %vm777_vm0, %v1178_v27 }
 0x201   :  { %v322_v44 = vpop.f32.mrb[0].mxu1 }
 0x202   :  { %vm328_vm1 = vcmp.ge.f32.partialorder %v322_v44, 1.0  ;;  %v906_v45 = vpop.f32.mrb[1].mxu1 }
 0x203   :  { %v751_v46 = vsel %vm328_vm1, 1.0, %v1176_v0  ;;  %v325_v47 = vpop.f32.mrb[2].mxu1  ;;  %v329_v50 = vsel %vm328_vm1, 0.0, %v322_v44 }
 0x204   :  { %v332_v48 = vpack.c.bf16 %v751_v46, %v751_v46  ;;  %v907_v49 = vpop.f32.mrb[3].mxu1 }
 0x205   :  { %v374_v51 = vpop.f32.mrb[8].mxu0 }
 0x206   :  { %333 = vst [vmem:[#allocation8] sm:$0xf] %v332_v48  ;;  %v380_v52 = vadd.f32 %v374_v51, %v329_v50  ;;  %v926_v53 = vpop.f32.mrb[9].mxu0 }
 0x207   :  { %v377_v54 = vpop.f32.mrb[10].mxu0 }
 0x208   :  { %v927_v55 = vpop.f32.mrb[11].mxu0  ;;  %vm381_vm2 = vcmp.ge.f32.partialorder %v380_v52, 1.0 }
 0x209   :  { %v755_v56 = vsel %vm381_vm2, 1.0, %v1176_v0  ;;  %v382_v58 = vsel %vm381_vm2, 0.0, %v380_v52 }
 0x20a   :  { %v385_v57 = vpack.c.bf16 %v755_v56, %v755_v56 }
 0x20c   :  { %387 = vst [vmem:[#allocation8 + $0x4] sm:$0xf] %v385_v57 }
 0x221   :  { %v428_v59 = vpop.f32.mrb[4].mxu1 }
 0x222   :  { %v434_v60 = vadd.f32 %v428_v59, %v382_v58  ;;  %v946_v61 = vpop.f32.mrb[5].mxu1 }
 0x223   :  { %v431_v62 = vpop.f32.mrb[6].mxu1 }
 0x224   :  { %v947_v63 = vpop.f32.mrb[7].mxu1  ;;  %vm435_vm3 = vcmp.ge.f32.partialorder %v434_v60, 1.0 }
 0x225   :  { %v436_v1 = vsel %vm435_vm3, 0.0, %v434_v60  ;;  %v759_v2 = vsel %vm435_vm3, 1.0, %v1176_v0  ;;  %v482_v3 = vpop.f32.mrb[12].mxu0 }
 0x226   :  { %v439_v4 = vpack.c.bf16 %v759_v2, %v759_v2  ;;  %v488_v5 = vadd.f32 %v482_v3, %v436_v1  ;;  %v966_v6 = vpop.f32.mrb[13].mxu0 }
 0x227   :  { %v485_v7 = vpop.f32.mrb[14].mxu0 }
 0x228   :  { %441 = vst [vmem:[#allocation8 + $0x8] sm:$0xf] %v439_v4  ;;  %v967_v8 = vpop.f32.mrb[15].mxu0  ;;  %vm489_vm4 = vcmp.ge.f32.partialorder %v488_v5, 1.0 }
 0x229   :  { %v763_v9 = vsel %vm489_vm4, 1.0, %v1176_v0  ;;  %v490_v11 = vsel %vm489_vm4, 0.0, %v488_v5 }
 0x22a   :  { %v493_v10 = vpack.c.bf16 %v763_v9, %v763_v9 }
 0x22c   :  { %495 = vst [vmem:[#allocation8 + $0xc] sm:$0xf] %v493_v10 }
 0x241   :  { %v536_v12 = vpop.f32.mrb[8].mxu1 }
 0x242   :  { %v542_v13 = vadd.f32 %v536_v12, %v490_v11  ;;  %v986_v14 = vpop.f32.mrb[9].mxu1 }
 0x243   :  { %v539_v15 = vpop.f32.mrb[10].mxu1 }
 0x244   :  { %v987_v16 = vpop.f32.mrb[11].mxu1  ;;  %vm543_vm5 = vcmp.ge.f32.partialorder %v542_v13, 1.0 }
 0x245   :  { %v544_v17 = vsel %vm543_vm5, 0.0, %v542_v13  ;;  %v767_v18 = vsel %vm543_vm5, 1.0, %v1176_v0  ;;  %v590_v19 = vpop.f32.mrb[16].mxu0 }
 0x246   :  { %v547_v20 = vpack.c.bf16 %v767_v18, %v767_v18  ;;  %v596_v21 = vadd.f32 %v590_v19, %v544_v17  ;;  %v1006_v22 = vpop.f32.mrb[17].mxu0 }
 0x247   :  { %v593_v23 = vpop.f32.mrb[18].mxu0 }
 0x248   :  { %549 = vst [vmem:[#allocation8 + $0x10] sm:$0xf] %v547_v20  ;;  %v1007_v24 = vpop.f32.mrb[19].mxu0  ;;  %vm597_vm6 = vcmp.ge.f32.partialorder %v596_v21, 1.0 }
 0x249   :  { %v771_v25 = vsel %vm597_vm6, 1.0, %v1176_v0  ;;  %v598_v27 = vsel %vm597_vm6, 0.0, %v596_v21 }
 0x24a   :  { %v601_v26 = vpack.c.bf16 %v771_v25, %v771_v25 }
 0x24c   :  { %603 = vst [vmem:[#allocation8 + $0x14] sm:$0xf] %v601_v26 }
 0x261   :  { %v644_v28 = vpop.f32.mrb[12].mxu1 }
 0x262   :  { %v650_v29 = vadd.f32 %v644_v28, %v598_v27  ;;  %v1026_v30 = vpop.f32.mrb[13].mxu1 }
 0x263   :  { %v647_v31 = vpop.f32.mrb[14].mxu1 }
 0x264   :  { %v1027_v32 = vpop.f32.mrb[15].mxu1  ;;  %vm651_vm7 = vcmp.ge.f32.partialorder %v650_v29, 1.0 }
 0x265   :  { %v652_v33 = vsel %vm651_vm7, 0.0, %v650_v29  ;;  %v775_v34 = vsel %vm651_vm7, 1.0, %v1176_v0  ;;  %v697_v35 = vpop.f32.mrb[20].mxu0 }
 0x266   :  { %v655_v36 = vpack.c.bf16 %v775_v34, %v775_v34  ;;  %v703_v37 = vadd.f32 %v697_v35, %v652_v33  ;;  %v1046_v38 = vpop.f32.mrb[21].mxu0 }
 0x267   :  { %v700_v39 = vpop.f32.mrb[22].mxu0 }
 0x268   :  { %657 = vst [vmem:[#allocation8 + $0x18] sm:$0xf] %v655_v36  ;;  %vm704_vm8 = vcmp.ge.f32.partialorder %v703_v37, 1.0  ;;  %v1047_v40 = vpop.f32.mrb[23].mxu0 }
 0x269   :  { %v779_v41 = vsel %vm704_vm8, 1.0, %v1176_v0 }
 0x26a   :  { %v707_v42 = vpack.c.bf16 %v779_v41, %v779_v41 }
 0x26c   :  { %709 = vst [vmem:[#allocation8 + $0x1c] sm:$0xf] %v707_v42 }
 0x26d   :  { %1154 = shalt.err (!%p1151_p0)
}
 0x26e   :  { %s1155_s27 = scalar_lea.hbm %s1482_s3, 512 }
 0x26f   :  { %p1156_p1 = scmp.ne.s32.totalorder %s1482_s3, %s1155_s27  ;;  %p1159_p2 = scmp.lt.u32.totalorder %s1155_s27, %s1482_s3 }
 0x271   :  { %p1161_p3 = pnand %p1159_p2, %p1156_p1 }
 0x273   :  { %1164 = shalt.err (!%p1161_p3)
}
 0x274   :  { %721 = dma.vmem_to_hbm [thread:$0]  %s716_s21, 512, %s1482_s3, [#allocation4], %s1173_s24, %s1173_s24, %s1174_s25  }
 0x275   :  { %1169 = dma.done.wait [#allocation4], 512  }
 0x276   :  { %1170 = vsyncadd [#allocation4], 4294966784 }
 0x277   :  { %725 = vsyncpa [#allocation3], 1 }
 0x278   :  { %726 = vsyncpa [#allocation6], 1 }
 0x279   :  { %727 = vsyncpa [#allocation4], 1 }

</bundles_post_ra>
